<compile_context>
chip_gen: v6e
topology: v6e:2x2x1
jax: 0.10.0
libtpu: 0.0.40
codegen_flags: <defaults>
</compile_context>

<pallas_src>
import functools

import jax
import jax.numpy as jnp
from jax import lax
from jax.experimental import pallas as pl
from jax.experimental.pallas import tpu as pltpu

EPS = 1e-3                      # matches BatchNorm2d(..., eps=0.001) in the module
LANE = 128
COMPUTE_DTYPE = jnp.bfloat16    # MXU input / output-writeback dtype (accum is f32)


def _round_up(x, m):
    return ((x + m - 1) // m) * m


def _pack_dim(c):
    """Lane-pad a channel dim only when the padding overhead is <= 1/8.

    Small channel counts keep their natural size and rely on the
    "block dim == full array dim" BlockSpec exception instead of inflating
    every HBM byte with zeros (32x at C=4)."""
    padded = _round_up(c, LANE)
    return padded if padded * 8 <= c * 9 else c


def _vmem_limit_bytes():
    """Scoped-VMEM limit: ~3/4 of physical (96 MiB on v5e/v6e, 48 MiB on v7x)."""
    cap = 64 * 1024 * 1024
    try:
        info = pltpu.get_tpu_info()
        cap = int(getattr(info, "vmem_capacity_bytes", cap))
    except Exception:
        pass
    return int(min(100 * 1024 * 1024, cap * 3 // 4))


def _pick_row_tile(N, H, W, c1, c2, budget_bytes, min_grid_steps=8):
    """Largest divisor of H fitting the VMEM budget that still yields enough
    grid steps (>= min_grid_steps) for pipeline overlap / megacore sharding."""

    def est(th):
        rows = th * W
        return (2 * (H + 2) * (W + 2) * c1 * 2        # resident padded image (bf16, x2)
                + (th + 2) * (W + 2) * c1 * 2         # sliced row window
                + 3 * 2 * rows * c2 * 2               # three bf16 outputs (x2)
                + 2 * 10 * c1 * c2 * 2                # conv weights (bf16, x2)
                + 2 * 4 * c2 * 4                      # epilogue constants (f32, x2)
                + 10 * rows * c2 * 4)                 # f32 accum / live epilogue

    divisors = [d for d in range(H, 0, -1) if H % d == 0]
    ok = [d for d in divisors
          if est(d) <= budget_bytes and ((d * W) % 8 == 0 or d == H)]
    if not ok:
        raise ValueError(
            "No row tile fits the VMEM budget (the per-batch padded image must "
            "stay resident). For very large H*W*C, switch the input to "
            "memory_space=pl.ANY with a manual windowed make_async_copy.")
    for d in ok:                                      # ok is sorted descending
        if N * (H // d) >= min_grid_steps:
            return d
    return ok[-1]                                     # most steps we can get


def _msrep_kernel(x_ref, w3_ref, w1_ref, sb_ref, out_ref, dense_ref, o1_ref):
    """One (batch, row-tile) grid step.

    x_ref:     (1, H+2, W+2, C1p) bf16  whole zero-padded image of this batch
                                        (resident across the row-tile axis)
    w3_ref:    (9, C1p, C2p)      bf16  3x3 weights, dense-BN scale folded in
    w1_ref:    (C1p, C2p)         bf16  1x1 weights, 1x1-BN scale folded in
    sb_ref:    (4, C2p)           f32   [dense bias; 1x1 bias; id scale; id bias]
    out_ref:   (1, TH*W, C2p)     bf16  dense + 1x1 + identity
    dense_ref: (1, TH*W, C2p)     bf16  relu(BN(conv3x3(x)))
    o1_ref:    (1, TH*W, C2p)     bf16  relu(BN(conv1x1(x)))
    """
    wd = x_ref.shape[2] - 2
    c1 = x_ref.shape[3]
    rows = out_ref.shape[1]
    c2 = out_ref.shape[2]
    th = rows // wd

    t = pl.program_id(1)
    r0 = pl.multiple_of(t * th, th)
    # Overlapping (TH+2)-row halo window sliced from the VMEM-resident image:
    # no halo-duplicated HBM copy, no im2col scratch round-trip.
    xw = x_ref[0, pl.ds(r0, th + 2), :, :]            # (TH+2, W+2, C1) bf16

    # 3x3 branch: nine accumulated (rows, C1) x (C1, C2) MXU dots (K = C1 each).
    acc = jnp.zeros((rows, c2), jnp.float32)
    center = None
    for kh in range(3):
        for kw in range(3):
            tap = xw[kh:kh + th, kw:kw + wd, :].reshape(rows, c1)
            if kh == 1 and kw == 1:
                center = tap
            acc = acc + jnp.dot(tap, w3_ref[kh * 3 + kw],
                                preferred_element_type=jnp.float32)

    dense_act = jnp.maximum(acc + sb_ref[0], 0.0)

    # 1x1 branch: its own GEMM, paying only K = C1 (not 9*C1).
    o1_act = jnp.maximum(
        jnp.dot(center, w1_ref[...], preferred_element_type=jnp.float32)
        + sb_ref[1], 0.0)

    # Identity branch: eval-mode BN of the input (center tap), f32 epilogue.
    ident = center.astype(jnp.float32) * sb_ref[2] + sb_ref[3]

    dense_ref[0] = dense_act.astype(dense_ref.dtype)
    o1_ref[0] = o1_act.astype(o1_ref.dtype)
    out_ref[0] = (dense_act + o1_act + ident).astype(out_ref.dtype)


def multi_scale_rep_conv(x_nchw, kp):
    """MultiScaleRepConv forward. Returns (out, fused) in NCHW like the module."""
    N, C1, H, W = x_nchw.shape
    C2, C1p, C2p = kp["c2"], kp["c1p"], kp["c2p"]
    assert C1 == kp["c1"] and C1 == C2, "identity branch requires c1 == c2"

    vmem_limit = _vmem_limit_bytes()
    TH = _pick_row_tile(N, H, W, C1p, C2p, budget_bytes=vmem_limit // 2)
    n_t = H // TH
    rows = TH * W

    # NCHW -> NHWC, halo pad of 1 (+ channel pad only if C1p > C1), bf16 cast.
    # Under jit this is a single fused producer; there is no second halo-tiled
    # copy of the input any more.
    x_nhwc = jnp.transpose(x_nchw, (0, 2, 3, 1))
    x_pad = jnp.pad(x_nhwc, ((0, 0), (1, 1), (1, 1), (0, C1p - C1)))
    x_pad = x_pad.astype(COMPUTE_DTYPE)

    out_k, dense_k, o1_k = pl.pallas_call(
        _msrep_kernel,
        out_shape=(
            jax.ShapeDtypeStruct((N, H * W, C2p), COMPUTE_DTYPE),
            jax.ShapeDtypeStruct((N, H * W, C2p), COMPUTE_DTYPE),
            jax.ShapeDtypeStruct((N, H * W, C2p), COMPUTE_DTYPE),
        ),
        grid_spec=pltpu.PrefetchScalarGridSpec(
            num_scalar_prefetch=0,
            grid=(N, n_t),
            in_specs=[
                # Whole padded image of batch n; index map ignores t, so the
                # block stays resident across the row-tile axis (one DMA/batch).
                pl.BlockSpec((1, H + 2, W + 2, C1p), lambda n, t: (n, 0, 0, 0)),
                pl.BlockSpec((9, C1p, C2p), lambda n, t: (0, 0, 0)),
                pl.BlockSpec((C1p, C2p), lambda n, t: (0, 0)),
                pl.BlockSpec((4, C2p), lambda n, t: (0, 0)),
            ],
            out_specs=[
                pl.BlockSpec((1, rows, C2p), lambda n, t: (n, t, 0)),
                pl.BlockSpec((1, rows, C2p), lambda n, t: (n, t, 0)),
                pl.BlockSpec((1, rows, C2p), lambda n, t: (n, t, 0)),
            ],
        ),
        compiler_params=pltpu.CompilerParams(
            dimension_semantics=("parallel", "parallel"),
            vmem_limit_bytes=vmem_limit),
    )(x_pad, kp["w3"], kp["w1"], kp["sb"])

    def to_nchw(y):
        y = y.reshape(N, H, W, C2p)[..., :C2].astype(jnp.float32)
        return jnp.transpose(y, (0, 3, 1, 2))

    out_nchw = to_nchw(out_k)
    fused_nchw = jnp.concatenate([to_nchw(dense_k), to_nchw(o1_k)], axis=1)
    return out_nchw, fused_nchw


def _fold_bn(gamma, beta, mean, var):
    scale = gamma / jnp.sqrt(var + EPS)
    return scale, beta - mean * scale


def pack_params(w3_t, w1_t, bn_d, bn_1, bn_i, c1, c2):
    """Fold BN scales into the conv weights and pack into the kernel layout."""
    assert c1 == c2, "identity branch requires c1 == c2"
    c1p, c2p = _pack_dim(c1), _pack_dim(c2)

    sd, bd = _fold_bn(*bn_d)
    s1, b1 = _fold_bn(*bn_1)
    si, bi = _fold_bn(*bn_i)

    # torch (C2, C1, 3, 3) -> (kh*3+kw, C1, C2) with the dense-BN scale folded.
    w3_k = jnp.transpose(w3_t, (2, 3, 1, 0)).reshape(9, c1, c2) * sd[None, None, :]
    # torch (C2, C1, 1, 1) -> (C1, C2) with the 1x1-BN scale folded.
    w1_k = jnp.transpose(w1_t[:, :, 0, 0], (1, 0)) * s1[None, :]

    w3 = jnp.zeros((9, c1p, c2p), jnp.float32).at[:, :c1, :c2].set(w3_k)
    w1 = jnp.zeros((c1p, c2p), jnp.float32).at[:c1, :c2].set(w1_k)

    sb = jnp.zeros((4, c2p), jnp.float32)
    sb = sb.at[0, :c2].set(bd).at[1, :c2].set(b1)
    sb = sb.at[2, :c1].set(si).at[3, :c1].set(bi)

    return dict(w3=w3.astype(COMPUTE_DTYPE), w1=w1.astype(COMPUTE_DTYPE),
                sb=sb, c1=c1, c2=c2, c1p=c1p, c2p=c2p)


def make_params(key, c1, c2):
    """Deterministic synthetic parameters matching the module's __init__ shapes."""
    ks = jax.random.split(key, 14)
    w3_t = jax.random.normal(ks[0], (c2, c1, 3, 3), jnp.float32) * 0.3
    w1_t = jax.random.normal(ks[1], (c2, c1, 1, 1), jnp.float32) * 0.3

    def bn(kg, kb, km, kv, c):
        gamma = 0.8 + 0.4 * jax.random.uniform(kg, (c,), jnp.float32)
        beta = 0.1 * jax.random.normal(kb, (c,), jnp.float32)
        mean = 0.1 * jax.random.normal(km, (c,), jnp.float32)
        var = 0.5 + jax.random.uniform(kv, (c,), jnp.float32)
        return gamma, beta, mean, var

    bn_d = bn(ks[2], ks[3], ks[4], ks[5], c2)        # rbr_dense BN
    bn_1 = bn(ks[6], ks[7], ks[8], ks[9], c2)        # rbr_1x1 BN
    bn_i = bn(ks[10], ks[11], ks[12], ks[13], c1)    # rbr_identity BN

    kp = pack_params(w3_t, w1_t, bn_d, bn_1, bn_i, c1, c2)
    ref = dict(w3_t=w3_t, w1_t=w1_t, bn_d=bn_d, bn_1=bn_1, bn_i=bn_i)
    return kp, ref


def reference_forward(x, ref):
    """Plain-JAX NCHW reference mirroring the PyTorch module (eval-mode BN)."""
    def bn_apply(y, bnp):
        g, b, m, v = bnp
        g = g[None, :, None, None]; b = b[None, :, None, None]
        m = m[None, :, None, None]; v = v[None, :, None, None]
        return (y - m) / jnp.sqrt(v + EPS) * g + b

    dn = ('NCHW', 'OIHW', 'NCHW')
    d = lax.conv_general_dilated(x, ref["w3_t"], (1, 1), ((1, 1), (1, 1)),
                                 dimension_numbers=dn)
    d = jnp.maximum(bn_apply(d, ref["bn_d"]), 0.0)
    o1 = lax.conv_general_dilated(x, ref["w1_t"], (1, 1), ((0, 0), (0, 0)),
                                  dimension_numbers=dn)
    o1 = jnp.maximum(bn_apply(o1, ref["bn_1"]), 0.0)
    idt = bn_apply(x, ref["bn_i"])
    out = d + o1 + idt
    fused = jnp.concatenate([d, o1], axis=1)
    return out, fused


if __name__ == "__main__":
    key = jax.random.PRNGKey(0)
    k_x, k_p = jax.random.split(key)

    N, C, H, W = 2, 4, 16, 16   # c1 == c2 == 4 so the identity BN branch is active
    x = jax.random.normal(k_x, (N, C, H, W), jnp.float32)
    kp, ref = make_params(k_p, C, C)

    fwd = jax.jit(functools.partial(multi_scale_rep_conv, kp=kp))
    out, fused = fwd(x)
    out = jax.block_until_ready(out)
    fused = jax.block_until_ready(fused)

    out_ref, fused_ref = reference_forward(x, ref)
    assert out.shape == (N, C, H, W)
    assert fused.shape == (N, 2 * C, H, W)
    # bf16 MXU inputs and bf16 output writeback (f32 accumulation / epilogue).
    assert jnp.allclose(out, out_ref, atol=5e-2, rtol=5e-2)
    assert jnp.allclose(fused, fused_ref, atol=5e-2, rtol=5e-2)

    print("KERNEL_OK")
</pallas_src>

<mosaic_0001>
module attributes {stable_mosaic.version = 11 : i64} {
  func.func @_msrep_kernel(%arg0: i32, %arg1: i32, %arg2: memref<1x18x18x4xbf16, #tpu.memory_space<vmem>>, %arg3: memref<9x4x4xbf16, #tpu.memory_space<vmem>>, %arg4: memref<4x4xbf16, #tpu.memory_space<vmem>>, %arg5: memref<4x4xf32, #tpu.memory_space<vmem>>, %arg6: memref<1x64x4xbf16, #tpu.memory_space<vmem>>, %arg7: memref<1x64x4xbf16, #tpu.memory_space<vmem>>, %arg8: memref<1x64x4xbf16, #tpu.memory_space<vmem>>) attributes {dimension_semantics = [#tpu.dimension_semantics<parallel>, #tpu.dimension_semantics<parallel>], iteration_bounds = array<i64: 2, 4>, scalar_prefetch = 0 : i64, scratch_operands = 0 : i64, tpu.core_type = #tpu.core_type<tc>, window_params = [{transform_indices = @transform_0, window_bounds = array<i64: 1, 18, 18, 4>}, {pipeline_mode = #tpu.pipeline_mode<synchronous>, transform_indices = @transform_1, window_bounds = array<i64: 9, 4, 4>}, {pipeline_mode = #tpu.pipeline_mode<synchronous>, transform_indices = @transform_2, window_bounds = array<i64: 4, 4>}, {pipeline_mode = #tpu.pipeline_mode<synchronous>, transform_indices = @transform_3, window_bounds = array<i64: 4, 4>}, {transform_indices = @transform_4, window_bounds = array<i64: 1, 64, 4>}, {transform_indices = @transform_5, window_bounds = array<i64: 1, 64, 4>}, {transform_indices = @transform_6, window_bounds = array<i64: 1, 64, 4>}]} {
    %c4_i32 = arith.constant 4 : i32
    %0 = arith.muli %arg1, %c4_i32 : i32
    %1 = tpu.assume_multiple %0, 4 : i32
    %c0 = arith.constant 0 : index
    %2 = arith.index_cast %1 : i32 to index
    %c0_0 = arith.constant 0 : index
    %c0_1 = arith.constant 0 : index
    %3 = vector.load %arg2[%c0, %2, %c0_0, %c0_1] : memref<1x18x18x4xbf16, #tpu.memory_space<vmem>>, vector<1x6x18x4xbf16>
    %4 = vector.shape_cast %3 : vector<1x6x18x4xbf16> to vector<6x18x4xbf16>
    %cst = arith.constant 0.000000e+00 : f32
    %5 = vector.broadcast %cst : f32 to vector<64x4xf32>
    %6 = vector.extract_strided_slice %4 {offsets = [0, 0, 0], sizes = [4, 16, 4], strides = [1, 1, 1]} : vector<6x18x4xbf16> to vector<4x16x4xbf16>
    %7 = vector.shape_cast %6 : vector<4x16x4xbf16> to vector<64x4xbf16>
    %c0_2 = arith.constant 0 : index
    %c0_3 = arith.constant 0 : index
    %c0_4 = arith.constant 0 : index
    %8 = vector.load %arg3[%c0_2, %c0_3, %c0_4] : memref<9x4x4xbf16, #tpu.memory_space<vmem>>, vector<1x4x4xbf16>
    %9 = vector.shape_cast %8 : vector<1x4x4xbf16> to vector<4x4xbf16>
    %cst_5 = arith.constant dense<0.000000e+00> : vector<64x4xf32>
    %10 = tpu.matmul %7, %9, %cst_5 {dimension_numbers = #tpu.dot_dimension_numbers<[1], [0], [0], [1], [0, 0, 1, 1], [], []>} : vector<64x4xbf16>, vector<4x4xbf16>, vector<64x4xf32> -> vector<64x4xf32>
    %11 = arith.addf %5, %10 : vector<64x4xf32>
    %12 = vector.extract_strided_slice %4 {offsets = [0, 1, 0], sizes = [4, 16, 4], strides = [1, 1, 1]} : vector<6x18x4xbf16> to vector<4x16x4xbf16>
    %13 = vector.shape_cast %12 : vector<4x16x4xbf16> to vector<64x4xbf16>
    %c1 = arith.constant 1 : index
    %c0_6 = arith.constant 0 : index
    %c0_7 = arith.constant 0 : index
    %14 = vector.load %arg3[%c1, %c0_6, %c0_7] : memref<9x4x4xbf16, #tpu.memory_space<vmem>>, vector<1x4x4xbf16>
    %15 = vector.shape_cast %14 : vector<1x4x4xbf16> to vector<4x4xbf16>
    %cst_8 = arith.constant dense<0.000000e+00> : vector<64x4xf32>
    %16 = tpu.matmul %13, %15, %cst_8 {dimension_numbers = #tpu.dot_dimension_numbers<[1], [0], [0], [1], [0, 0, 1, 1], [], []>} : vector<64x4xbf16>, vector<4x4xbf16>, vector<64x4xf32> -> vector<64x4xf32>
    %17 = arith.addf %11, %16 : vector<64x4xf32>
    %18 = vector.extract_strided_slice %4 {offsets = [0, 2, 0], sizes = [4, 16, 4], strides = [1, 1, 1]} : vector<6x18x4xbf16> to vector<4x16x4xbf16>
    %19 = vector.shape_cast %18 : vector<4x16x4xbf16> to vector<64x4xbf16>
    %c2 = arith.constant 2 : index
    %c0_9 = arith.constant 0 : index
    %c0_10 = arith.constant 0 : index
    %20 = vector.load %arg3[%c2, %c0_9, %c0_10] : memref<9x4x4xbf16, #tpu.memory_space<vmem>>, vector<1x4x4xbf16>
    %21 = vector.shape_cast %20 : vector<1x4x4xbf16> to vector<4x4xbf16>
    %cst_11 = arith.constant dense<0.000000e+00> : vector<64x4xf32>
    %22 = tpu.matmul %19, %21, %cst_11 {dimension_numbers = #tpu.dot_dimension_numbers<[1], [0], [0], [1], [0, 0, 1, 1], [], []>} : vector<64x4xbf16>, vector<4x4xbf16>, vector<64x4xf32> -> vector<64x4xf32>
    %23 = arith.addf %17, %22 : vector<64x4xf32>
    %24 = vector.extract_strided_slice %4 {offsets = [1, 0, 0], sizes = [4, 16, 4], strides = [1, 1, 1]} : vector<6x18x4xbf16> to vector<4x16x4xbf16>
    %25 = vector.shape_cast %24 : vector<4x16x4xbf16> to vector<64x4xbf16>
    %c3 = arith.constant 3 : index
    %c0_12 = arith.constant 0 : index
    %c0_13 = arith.constant 0 : index
    %26 = vector.load %arg3[%c3, %c0_12, %c0_13] : memref<9x4x4xbf16, #tpu.memory_space<vmem>>, vector<1x4x4xbf16>
    %27 = vector.shape_cast %26 : vector<1x4x4xbf16> to vector<4x4xbf16>
    %cst_14 = arith.constant dense<0.000000e+00> : vector<64x4xf32>
    %28 = tpu.matmul %25, %27, %cst_14 {dimension_numbers = #tpu.dot_dimension_numbers<[1], [0], [0], [1], [0, 0, 1, 1], [], []>} : vector<64x4xbf16>, vector<4x4xbf16>, vector<64x4xf32> -> vector<64x4xf32>
    %29 = arith.addf %23, %28 : vector<64x4xf32>
    %30 = vector.extract_strided_slice %4 {offsets = [1, 1, 0], sizes = [4, 16, 4], strides = [1, 1, 1]} : vector<6x18x4xbf16> to vector<4x16x4xbf16>
    %31 = vector.shape_cast %30 : vector<4x16x4xbf16> to vector<64x4xbf16>
    %c4 = arith.constant 4 : index
    %c0_15 = arith.constant 0 : index
    %c0_16 = arith.constant 0 : index
    %32 = vector.load %arg3[%c4, %c0_15, %c0_16] : memref<9x4x4xbf16, #tpu.memory_space<vmem>>, vector<1x4x4xbf16>
    %33 = vector.shape_cast %32 : vector<1x4x4xbf16> to vector<4x4xbf16>
    %cst_17 = arith.constant dense<0.000000e+00> : vector<64x4xf32>
    %34 = tpu.matmul %31, %33, %cst_17 {dimension_numbers = #tpu.dot_dimension_numbers<[1], [0], [0], [1], [0, 0, 1, 1], [], []>} : vector<64x4xbf16>, vector<4x4xbf16>, vector<64x4xf32> -> vector<64x4xf32>
    %35 = arith.addf %29, %34 : vector<64x4xf32>
    %36 = vector.extract_strided_slice %4 {offsets = [1, 2, 0], sizes = [4, 16, 4], strides = [1, 1, 1]} : vector<6x18x4xbf16> to vector<4x16x4xbf16>
    %37 = vector.shape_cast %36 : vector<4x16x4xbf16> to vector<64x4xbf16>
    %c5 = arith.constant 5 : index
    %c0_18 = arith.constant 0 : index
    %c0_19 = arith.constant 0 : index
    %38 = vector.load %arg3[%c5, %c0_18, %c0_19] : memref<9x4x4xbf16, #tpu.memory_space<vmem>>, vector<1x4x4xbf16>
    %39 = vector.shape_cast %38 : vector<1x4x4xbf16> to vector<4x4xbf16>
    %cst_20 = arith.constant dense<0.000000e+00> : vector<64x4xf32>
    %40 = tpu.matmul %37, %39, %cst_20 {dimension_numbers = #tpu.dot_dimension_numbers<[1], [0], [0], [1], [0, 0, 1, 1], [], []>} : vector<64x4xbf16>, vector<4x4xbf16>, vector<64x4xf32> -> vector<64x4xf32>
    %41 = arith.addf %35, %40 : vector<64x4xf32>
    %42 = vector.extract_strided_slice %4 {offsets = [2, 0, 0], sizes = [4, 16, 4], strides = [1, 1, 1]} : vector<6x18x4xbf16> to vector<4x16x4xbf16>
    %43 = vector.shape_cast %42 : vector<4x16x4xbf16> to vector<64x4xbf16>
    %c6 = arith.constant 6 : index
    %c0_21 = arith.constant 0 : index
    %c0_22 = arith.constant 0 : index
    %44 = vector.load %arg3[%c6, %c0_21, %c0_22] : memref<9x4x4xbf16, #tpu.memory_space<vmem>>, vector<1x4x4xbf16>
    %45 = vector.shape_cast %44 : vector<1x4x4xbf16> to vector<4x4xbf16>
    %cst_23 = arith.constant dense<0.000000e+00> : vector<64x4xf32>
    %46 = tpu.matmul %43, %45, %cst_23 {dimension_numbers = #tpu.dot_dimension_numbers<[1], [0], [0], [1], [0, 0, 1, 1], [], []>} : vector<64x4xbf16>, vector<4x4xbf16>, vector<64x4xf32> -> vector<64x4xf32>
    %47 = arith.addf %41, %46 : vector<64x4xf32>
    %48 = vector.extract_strided_slice %4 {offsets = [2, 1, 0], sizes = [4, 16, 4], strides = [1, 1, 1]} : vector<6x18x4xbf16> to vector<4x16x4xbf16>
    %49 = vector.shape_cast %48 : vector<4x16x4xbf16> to vector<64x4xbf16>
    %c7 = arith.constant 7 : index
    %c0_24 = arith.constant 0 : index
    %c0_25 = arith.constant 0 : index
    %50 = vector.load %arg3[%c7, %c0_24, %c0_25] : memref<9x4x4xbf16, #tpu.memory_space<vmem>>, vector<1x4x4xbf16>
    %51 = vector.shape_cast %50 : vector<1x4x4xbf16> to vector<4x4xbf16>
    %cst_26 = arith.constant dense<0.000000e+00> : vector<64x4xf32>
    %52 = tpu.matmul %49, %51, %cst_26 {dimension_numbers = #tpu.dot_dimension_numbers<[1], [0], [0], [1], [0, 0, 1, 1], [], []>} : vector<64x4xbf16>, vector<4x4xbf16>, vector<64x4xf32> -> vector<64x4xf32>
    %53 = arith.addf %47, %52 : vector<64x4xf32>
    %54 = vector.extract_strided_slice %4 {offsets = [2, 2, 0], sizes = [4, 16, 4], strides = [1, 1, 1]} : vector<6x18x4xbf16> to vector<4x16x4xbf16>
    %55 = vector.shape_cast %54 : vector<4x16x4xbf16> to vector<64x4xbf16>
    %c8 = arith.constant 8 : index
    %c0_27 = arith.constant 0 : index
    %c0_28 = arith.constant 0 : index
    %56 = vector.load %arg3[%c8, %c0_27, %c0_28] : memref<9x4x4xbf16, #tpu.memory_space<vmem>>, vector<1x4x4xbf16>
    %57 = vector.shape_cast %56 : vector<1x4x4xbf16> to vector<4x4xbf16>
    %cst_29 = arith.constant dense<0.000000e+00> : vector<64x4xf32>
    %58 = tpu.matmul %55, %57, %cst_29 {dimension_numbers = #tpu.dot_dimension_numbers<[1], [0], [0], [1], [0, 0, 1, 1], [], []>} : vector<64x4xbf16>, vector<4x4xbf16>, vector<64x4xf32> -> vector<64x4xf32>
    %59 = arith.addf %53, %58 : vector<64x4xf32>
    %c0_30 = arith.constant 0 : index
    %c0_31 = arith.constant 0 : index
    %60 = vector.load %arg5[%c0_30, %c0_31] : memref<4x4xf32, #tpu.memory_space<vmem>>, vector<1x4xf32>
    %61 = vector.shape_cast %60 : vector<1x4xf32> to vector<4xf32>
    %62 = vector.shape_cast %61 : vector<4xf32> to vector<1x4xf32>
    %63 = vector.broadcast %62 : vector<1x4xf32> to vector<64x4xf32>
    %64 = arith.addf %59, %63 : vector<64x4xf32>
    %cst_32 = arith.constant 0.000000e+00 : f32
    %65 = vector.broadcast %cst_32 : f32 to vector<64x4xf32>
    %66 = arith.maximumf %64, %65 : vector<64x4xf32>
    %c0_33 = arith.constant 0 : index
    %c0_34 = arith.constant 0 : index
    %67 = vector.load %arg4[%c0_33, %c0_34] : memref<4x4xbf16, #tpu.memory_space<vmem>>, vector<4x4xbf16>
    %cst_35 = arith.constant dense<0.000000e+00> : vector<64x4xf32>
    %68 = tpu.matmul %31, %67, %cst_35 {dimension_numbers = #tpu.dot_dimension_numbers<[1], [0], [0], [1], [0, 0, 1, 1], [], []>} : vector<64x4xbf16>, vector<4x4xbf16>, vector<64x4xf32> -> vector<64x4xf32>
    %c1_36 = arith.constant 1 : index
    %c0_37 = arith.constant 0 : index
    %69 = vector.load %arg5[%c1_36, %c0_37] : memref<4x4xf32, #tpu.memory_space<vmem>>, vector<1x4xf32>
    %70 = vector.shape_cast %69 : vector<1x4xf32> to vector<4xf32>
    %71 = vector.shape_cast %70 : vector<4xf32> to vector<1x4xf32>
    %72 = vector.broadcast %71 : vector<1x4xf32> to vector<64x4xf32>
    %73 = arith.addf %68, %72 : vector<64x4xf32>
    %cst_38 = arith.constant 0.000000e+00 : f32
    %74 = vector.broadcast %cst_38 : f32 to vector<64x4xf32>
    %75 = arith.maximumf %73, %74 : vector<64x4xf32>
    %76 = arith.extf %31 : vector<64x4xbf16> to vector<64x4xf32>
    %c2_39 = arith.constant 2 : index
    %c0_40 = arith.constant 0 : index
    %77 = vector.load %arg5[%c2_39, %c0_40] : memref<4x4xf32, #tpu.memory_space<vmem>>, vector<1x4xf32>
    %78 = vector.shape_cast %77 : vector<1x4xf32> to vector<4xf32>
    %79 = vector.shape_cast %78 : vector<4xf32> to vector<1x4xf32>
    %80 = vector.broadcast %79 : vector<1x4xf32> to vector<64x4xf32>
    %81 = arith.mulf %76, %80 : vector<64x4xf32>
    %c3_41 = arith.constant 3 : index
    %c0_42 = arith.constant 0 : index
    %82 = vector.load %arg5[%c3_41, %c0_42] : memref<4x4xf32, #tpu.memory_space<vmem>>, vector<1x4xf32>
    %83 = vector.shape_cast %82 : vector<1x4xf32> to vector<4xf32>
    %84 = vector.shape_cast %83 : vector<4xf32> to vector<1x4xf32>
    %85 = vector.broadcast %84 : vector<1x4xf32> to vector<64x4xf32>
    %86 = arith.addf %81, %85 : vector<64x4xf32>
    %87 = arith.truncf %66 : vector<64x4xf32> to vector<64x4xbf16>
    %c0_43 = arith.constant 0 : index
    %c0_44 = arith.constant 0 : index
    %c0_45 = arith.constant 0 : index
    %88 = vector.load %arg7[%c0_43, %c0_44, %c0_45] : memref<1x64x4xbf16, #tpu.memory_space<vmem>>, vector<1x64x4xbf16>
    %89 = vector.shape_cast %88 : vector<1x64x4xbf16> to vector<64x4xbf16>
    %90 = vector.shape_cast %87 : vector<64x4xbf16> to vector<1x64x4xbf16>
    tpu.vector_store %arg7[%c0_43, %c0_44, %c0_45], %90 {strides = array<i32>} : memref<1x64x4xbf16, #tpu.memory_space<vmem>>, vector<1x64x4xbf16>,
    %91 = arith.truncf %75 : vector<64x4xf32> to vector<64x4xbf16>
    %c0_46 = arith.constant 0 : index
    %c0_47 = arith.constant 0 : index
    %c0_48 = arith.constant 0 : index
    %92 = vector.load %arg8[%c0_46, %c0_47, %c0_48] : memref<1x64x4xbf16, #tpu.memory_space<vmem>>, vector<1x64x4xbf16>
    %93 = vector.shape_cast %92 : vector<1x64x4xbf16> to vector<64x4xbf16>
    %94 = vector.shape_cast %91 : vector<64x4xbf16> to vector<1x64x4xbf16>
    tpu.vector_store %arg8[%c0_46, %c0_47, %c0_48], %94 {strides = array<i32>} : memref<1x64x4xbf16, #tpu.memory_space<vmem>>, vector<1x64x4xbf16>,
    %95 = arith.addf %66, %75 : vector<64x4xf32>
    %96 = arith.addf %95, %86 : vector<64x4xf32>
    %97 = arith.truncf %96 : vector<64x4xf32> to vector<64x4xbf16>
    %c0_49 = arith.constant 0 : index
    %c0_50 = arith.constant 0 : index
    %c0_51 = arith.constant 0 : index
    %98 = vector.load %arg6[%c0_49, %c0_50, %c0_51] : memref<1x64x4xbf16, #tpu.memory_space<vmem>>, vector<1x64x4xbf16>
    %99 = vector.shape_cast %98 : vector<1x64x4xbf16> to vector<64x4xbf16>
    %100 = vector.shape_cast %97 : vector<64x4xbf16> to vector<1x64x4xbf16>
    tpu.vector_store %arg6[%c0_49, %c0_50, %c0_51], %100 {strides = array<i32>} : memref<1x64x4xbf16, #tpu.memory_space<vmem>>, vector<1x64x4xbf16>,
    return
  }
  func.func @transform_0(%arg0: i32, %arg1: i32) -> (i32, i32, i32, i32) {
    %c0_i32 = arith.constant 0 : i32
    %c0_i32_0 = arith.constant 0 : i32
    %c0_i32_1 = arith.constant 0 : i32
    %c0_i32_2 = arith.constant 0 : i32
    return %arg0, %c0_i32, %c0_i32_0, %c0_i32_1 : i32, i32, i32, i32
  }
  func.func @transform_1(%arg0: i32, %arg1: i32) -> (i32, i32, i32) {
    %c0_i32 = arith.constant 0 : i32
    %c0_i32_0 = arith.constant 0 : i32
    %c0_i32_1 = arith.constant 0 : i32
    %c0_i32_2 = arith.constant 0 : i32
    return %c0_i32, %c0_i32_0, %c0_i32_1 : i32, i32, i32
  }
  func.func @transform_2(%arg0: i32, %arg1: i32) -> (i32, i32) {
    %c0_i32 = arith.constant 0 : i32
    %c0_i32_0 = arith.constant 0 : i32
    %c0_i32_1 = arith.constant 0 : i32
    return %c0_i32, %c0_i32_0 : i32, i32
  }
  func.func @transform_3(%arg0: i32, %arg1: i32) -> (i32, i32) {
    %c0_i32 = arith.constant 0 : i32
    %c0_i32_0 = arith.constant 0 : i32
    %c0_i32_1 = arith.constant 0 : i32
    return %c0_i32, %c0_i32_0 : i32, i32
  }
  func.func @transform_4(%arg0: i32, %arg1: i32) -> (i32, i32, i32) {
    %c0_i32 = arith.constant 0 : i32
    %c0_i32_0 = arith.constant 0 : i32
    return %arg0, %arg1, %c0_i32 : i32, i32, i32
  }
  func.func @transform_5(%arg0: i32, %arg1: i32) -> (i32, i32, i32) {
    %c0_i32 = arith.constant 0 : i32
    %c0_i32_0 = arith.constant 0 : i32
    return %arg0, %arg1, %c0_i32 : i32, i32, i32
  }
  func.func @transform_6(%arg0: i32, %arg1: i32) -> (i32, i32, i32) {
    %c0_i32 = arith.constant 0 : i32
    %c0_i32_0 = arith.constant 0 : i32
    return %arg0, %arg1, %c0_i32 : i32, i32, i32
  }
}

</mosaic_0001>

<bundles_post_ra>
// kernel: multi_scale_rep_conv.1
= control target key start
LH: loop header
LB: loop body
LE: loop exit
PB: predicated region body
PF: predicated region fallthrough
CT: control target
= control target key end

     0   :  { %s2245_s21 = smov 0   ;;  %s2247_s22 = smov 0   ;;  %s2963_s0 = inlined_call_operand.vmem [shape: bf16[2,18,18,4], index: 0, kind: input, shape index: {}]   ;;  %s2964_s1 = inlined_call_operand.vmem [shape: bf16[9,4,4], index: 1, kind: input, shape index: {}]   ;;  %s2965_s2 = inlined_call_operand.vmem [shape: bf16[4,4], index: 2, kind: input, shape index: {}]   ;;  %s2966_s3 = inlined_call_operand.vmem [shape: f32[4,4], index: 3, kind: input, shape index: {}]   ;;  %s2967_s4 = inlined_call_operand.vmem [shape: bf16[2,256,4], index: 4, kind: output, shape index: {0}]   ;;  %s2968_s5 = inlined_call_operand.vmem [shape: bf16[2,256,4], index: 5, kind: output, shape index: {1}]   ;;  %s2969_s6 = inlined_call_operand.vmem [shape: bf16[2,256,4], index: 6, kind: output, shape index: {2}]  }
   0x1   :  { %s2249_s23 = smov 0   ;;  %s2251_s24 = smov 0  }
   0x2   :  { %s2253_s25 = smov 0  }
   0x3 LB: > { %s26_s26 = sadd.s32 1, %s2200_s23  ;;  %s29_s27 = sadd.s32 1, %s2204_s24  ;;  %s2208_s25 = sphi %s2253_s25, %s17_s25   ;;  %s2204_s24 = sphi %s2251_s24, %s2998_s24   ;;  %s2200_s23 = sphi %s2249_s23, %s2997_s23   ;;  %s2196_s22 = sphi %s2247_s22, %s2996_s22   ;;  %s2192_s21 = sphi %s2245_s21, %s2995_s21  }
   0x4   : > { %p27_p0 = scmp.ge.s32.totalorder %s26_s26, 4  ;;  %p1822_p1 = scmp.ge.s32.totalorder %s2208_s25, 1 }
   0x5   : > { %p235_p2 = scmp.lt.s32.totalorder %s2208_s25, 9 }
   0x6   : > { %s3000_s26 = smov (%p27_p0, %s26_s26), 0  ;;  %s3002_s27 = smov (!%p27_p0, %s29_s27), %s2204_s24 }
   0x7   : > { %p236_p3 = pnand %p1822_p1, %p235_p2  ;;  %p31_p4 = scmp.ge.s32.totalorder %s3002_s27, 2 }
   0x9   : > { %s3004_s27 = smov (%p31_p4, %s3002_s27), 0  ;;  %239 = sbr.rel (%p236_p3) target bundleno = 322 (0x142), region = 36 }
   0xe   : > { %v345_v0 = vld [vmem:[%s2964_s1] sm:$0x3]  ;;  %vm472_vm0 = vcmask 1041408   ;;  %v1836_v1 = vld [vmem:[%s2964_s1 + $0x2] sm:$0x3]  ;;  %p287_p5 = scmp.lt.s32.totalorder %s2196_s22, 1 }
   0xf   : > { %2114 = vmatprep.subr.msk.bf16.mxu1 %vm472_vm0, %v345_v0  ;;  %v574_v2 = vsel %vm472_vm0, %v345_v0, 0  ;;  %2113 = vmatprep.subr.msk.bf16.mxu0 %vm472_vm0, %v1836_v1  ;;  %v474_v3 = vsel %vm472_vm0, %v1836_v1, 0  ;;  %v1857_v4 = vld [vmem:[%s2964_s1 + $0x4] sm:$0x3]  ;;  %s1938_s10 = smul.u32 48, %s2192_s21  ;;  %vm459_vm1 = vcmask 31744  }
  0x10   : > { %2024 = vmatpush3.bf16.msra.mxu1 %v574_v2  ;;  %s3006_s22 = smov (!%p287_p5, %s2196_s22), 1  ;;  %2014 = vmatpush3.bf16.msra.mxu0 %v474_v3  ;;  %v1866_v5 = vld [vmem:[%s2964_s1 + $0x6] sm:$0x3]  ;;  %vm346_vm2 = vsmask.f32 3328  ;;  %v2343_v25 = vsel %vm472_vm0, %v1857_v4, 0 }
  0x11   : > { %2115 = vmatprep.subr.msk.bf16.mxu0 %vm472_vm0, %v1857_v4  ;;  %s2123_s13 = smul.u32 216, %s3006_s22  ;;  %2116 = vmatprep.subr.msk.bf16.mxu1 %vm472_vm0, %v1866_v5  ;;  %vm347_vm3 = vsmask.f32 7440  ;;  %v789_v19 = vsel %vm472_vm0, %v1866_v5, 0  ;;  %v2336_v20 = vld [vmem:[%s2964_s1 + $0xa] sm:$0x3] }
  0x12   : > { %vm645_vm4 = vcmask 1042432   ;;  %vm646_vm5 = vcmask 1046532   ;;  %vm2355_vm6 = vmor %vm346_vm2, %vm347_vm3  ;;  %vm1527_vm8 = vcmask 27648  }
  0x13   : > { %s291_s16 = scalar_lea.vmem %s2963_s0, %s2123_s13  ;;  %vm2423_vm7 = vmor %vm645_vm4, %vm646_vm5  ;;  %s1824_s13 = sshll.u32 %s2192_s21, 3 }
  0x14   : > { %s2302_s17 = scalar_lea.vmem %s291_s16, %s1938_s10  ;;  %p295_p6 = scmp.lt.s32.totalorder %s1824_s13, 31 }
  0x15   : > { %v2305_v6 = vld [vmem:[%s2302_s17] sm:$0xf]  ;;  %v2308_v7 = vld [vmem:[%s2302_s17 + $0x4] sm:$0xf]  ;;  %v2311_v8 = vld [vmem:[%s2302_s17 + $0xc] sm:$0xf] }
  0x16   : > { %v350_v9 = vshrl.u32 %v2305_v6, 16  ;;  %v353_v10 = vshll.u32 %v2305_v6, 16  ;;  %v363_v11 = vshrl.u32 %v2308_v7, 16  ;;  %v1845_v12 = vcombine.low %v2305_v6, %v2308_v7  ;;  %v2319_v13 = vld [vmem:[%s2302_s17 + $0x10] sm:$0xf]  ;;  %s3008_s13 = smov (!%p295_p6, %s1824_s13), 31 }
  0x17   : > { %v374_v14 = vshrl.u32 %v2311_v8, 16  ;;  %v377_v15 = vshll.u32 %v2311_v8, 16  ;;  %v2324_v16 = vld [vmem:[%s2302_s17 + $0x8] sm:$0x1]  ;;  %v387_v17 = vshrl.u32 %v2319_v13, 16  ;;  %v2330_v18 = vcombine.low %v2311_v8, %v2319_v13  ;;  %s1825_s21 = sshll.u32 %s3006_s22, 5 }
  0x18   : > { %2025 = vmatprep.mubr.msk.bf16.mxu1 %vm459_vm1, %v1845_v12  ;;  %v352_v21 = vrot.slane %v350_v9, 4  ;;  %v355_v22 = vrot.slane %v353_v10, 5  ;;  %v359_v23 = vshll.u32 %v2308_v7, 16  ;;  %v2340_v24 = vld [vmem:[%s2302_s17 + $0x14] sm:$0x1]  ;;  %v1853_v26 = vrot.slane %v2305_v6, 9  ;;  %s298_s22 = sadd.s32 %s1825_s21, %s3008_s13 }
  0x19   : > { %2026 = vmatmul.mubr.msk.bf16.vlgmr.msra.gmra.mxu1 %vm459_vm1, %v2330_v18  ;;  %v365_v27 = vrot.slane %v363_v11, 4  ;;  %v369_v28 = vshll.u32 %v2324_v16, 16  ;;  %v376_v31 = vrot.slane %v374_v14, 4  ;;  %v379_v32 = vrot.slane %v377_v15, 5  ;;  %v2350_v33 = vld [vmem:[%s2302_s17 + $0x18] sm:$0xf] }
  0x1a   : > { %v356_v29 = vor.u32 %v355_v22, %v352_v21  ;;  %v361_v30 = vrot.slane %v359_v23, 5  ;;  %2044 = vmatpush3.bf16.msra.mxu1 %v789_v19  ;;  %v650_v34 = vrot.slane %v2308_v7, 5  ;;  %v383_v36 = vshll.u32 %v2319_v13, 16  ;;  %v2362_v39 = vld [vmem:[%s2302_s17 + $0x1c] sm:$0xf]  ;;  %s2760_s20 = sshll.u32 %s298_s22, 2 }
  0x1b   : > { %v389_v37 = vrot.slane %v387_v17, 4  ;;  %v393_v38 = vshll.u32 %v2340_v24, 16  ;;  %2118 = vmatprep.subr.msk.bf16.mxu1 %vm472_vm0, %v2336_v20  ;;  %v371_v42 = vrot.slane %v369_v28, 5  ;;  %v380_v43 = vor.u32 %v379_v32, %v376_v31  ;;  %v2367_v44 = vld [vmem:[%s2302_s17 + $0x24] sm:$0xf]  ;;  %s2787_s30 = scalar_lea.vmem %s2969_s6, %s2760_s20  ;;  %s2867_s11 = scalar_lea.vmem %s2968_s5, %s2760_s20 }
  0x1c   : > { %v357_v40 = vrot.slane %v356_v29, 4  ;;  %v366_v41 = vor.u32 %v365_v27, %v361_v30  ;;  %v385_v45 = vrot.slane %v383_v36, 5  ;;  %v398_v47 = vshrl.u32 %v2350_v33, 16  ;;  %v2375_v53 = vld [vmem:[%s2302_s17 + $0x28] sm:$0xf]  ;;  %s2887_s14 = scalar_lea.vmem %s2967_s4, %s2760_s20 }
  0x1d   : > { %v395_v46 = vrot.slane %v393_v38, 5  ;;  %v401_v48 = vshll.u32 %v2350_v33, 16  ;;  %v381_v51 = vrot.slane %v380_v43, 4  ;;  %v411_v52 = vshrl.u32 %v2362_v39, 16  ;;  %v2384_v58 = vld [vmem:[%s2302_s17 + $0x20] sm:$0x1] }
  0x1e   : > { %v362_v49 = vsel %vm2355_vm6, %v357_v40, %v361_v30  ;;  %v367_v50 = vrot.slane %v366_v41, 4  ;;  %v390_v54 = vor.u32 %v389_v37, %v385_v45  ;;  %v2379_v55 = vcombine.low %v2350_v33, %v2362_v39  ;;  %v2411_v11 = vld [vmem:[%s2302_s17 + $0x2c] sm:$0x1] }
  0x1f   : > { %v422_v56 = vshrl.u32 %v2367_v44, 16  ;;  %v425_v57 = vshll.u32 %v2367_v44, 16  ;;  %v652_v59 = vrot.slane %v650_v34, 4  ;;  %v2392_v61 = vsel %vm2355_vm6, %v381_v51, %v385_v45 }
  0x20   : > { %v372_v60 = vsel %vm2355_vm6, %v367_v50, %v371_v42  ;;  %v2396_v62 = vcombine.low %v2367_v44, %v2375_v53  ;;  %v391_v0 = vrot.slane %v390_v54, 4  ;;  %2029 = vmatprep.mubr.msk.bf16.mxu1 %vm459_vm1, %v2379_v55  ;;  %v435_v1 = vshrl.u32 %v2375_v53, 16 }
  0x21   : > { %v1837_v63 = vcombine.low %v362_v49, %v372_v60  ;;  %v400_v2 = vrot.slane %v398_v47, 4  ;;  %v403_v3 = vrot.slane %v401_v48, 5  ;;  %v407_v4 = vshll.u32 %v2362_v39, 16 }
  0x22   : > { %2030 = vmatmul.mubr.msk.bf16.gmra.mxu1 %vm459_vm1, %v2396_v62  ;;  %v413_v5 = vrot.slane %v411_v52, 4  ;;  %v417_v9 = vshll.u32 %v2384_v58, 16  ;;  %v2408_v10 = vsel %vm2355_vm6, %v391_v0, %v395_v46  ;;  %v424_v12 = vrot.slane %v422_v56, 4 }
  0x23   : > { %2015 = vmatprep.mubr.msk.bf16.mxu0 %vm459_vm1, %v1837_v63  ;;  %v427_v14 = vrot.slane %v425_v57, 5  ;;  %v431_v15 = vshll.u32 %v2375_v53, 16  ;;  %2045 = vmatprep.mubr.msk.bf16.mxu1 %vm459_vm1, %v2330_v18  ;;  %v653_v17 = vrot.slane %v2324_v16, 5  ;;  %v2419_v19 = vcombine.low %v2392_v61, %v2408_v10  ;;  %v1872_v16 = vld [vmem:[%s2964_s1 + $0x8] sm:$0x3] }
  0x24   : > { %v404_v21 = vor.u32 %v403_v3, %v400_v2  ;;  %v409_v22 = vrot.slane %v407_v4, 5  ;;  %v657_v27 = vrot.slane %v2319_v13, 5  ;;  %v437_v30 = vrot.slane %v435_v1, 4  ;;  %v341_v3 = vld [vmem:[%s2302_s17 + $0x38] sm:$0x1] }
  0x25   : > { %v428_v28 = vor.u32 %v427_v14, %v424_v12  ;;  %v433_v29 = vrot.slane %v431_v15, 5  ;;  %2016 = vmatmul.mubr.msk.bf16.vlgmr.msra.gmra.mxu0 %vm459_vm1, %v2419_v19  ;;  %v419_v32 = vrot.slane %v417_v9, 5  ;;  %v441_v36 = vshll.u32 %v2411_v11, 16 }
  0x26   : > { %v405_v18 = vrot.slane %v404_v21, 4  ;;  %v414_v31 = vor.u32 %v413_v5, %v409_v22  ;;  %2034 = vmatpush3.bf16.msra.mxu0 %v2343_v25  ;;  %v651_v13 = vsel %vm2423_vm7, %v1853_v26, %v650_v34  ;;  %v997_v40 = vsel %vm472_vm0, %v2336_v20, 0  ;;  %v1891_v20 = vld [vmem:[%s2964_s1 + $0xe] sm:$0x3] }
  0x27   : > { %v429_v37 = vrot.slane %v428_v28, 4  ;;  %v438_v38 = vor.u32 %v437_v30, %v433_v29  ;;  %v443_v43 = vrot.slane %v441_v36, 5  ;;  %v654_v25 = vsel %vm2423_vm7, %v652_v59, %v653_v17  ;;  %2117 = vmatprep.subr.msk.bf16.mxu0 %vm472_vm0, %v1872_v16  ;;  %v2526_v30 = vld [vmem:[%s2302_s17 + $0x40] sm:$0xf] }
  0x28   : > { %v2445_v41 = vsel %vm2355_vm6, %v405_v18, %v409_v22  ;;  %v415_v42 = vrot.slane %v414_v31, 4  ;;  %v1854_v26 = vrot.slane %v2311_v8, 9  ;;  %v659_v34 = vrot.slane %v657_v27, 4  ;;  %v339_v8 = vld [vmem:[%s2302_s17 + $0x30] sm:$0xf] }
  0x29   : > { %v2452_v6 = vsel %vm2355_vm6, %v429_v37, %v433_v29  ;;  %v439_v7 = vrot.slane %v438_v38, 4  ;;  %v660_v45 = vrot.slane %v2340_v24, 5  ;;  %v1858_v49 = vcombine.low %v651_v13, %v654_v25  ;;  %v340_v24 = vld [vmem:[%s2302_s17 + $0x34] sm:$0xf]  ;;  %v2523_v29 = vld [vmem:[%s2302_s17 + $0x3c] sm:$0xf] }
  0x2a   : > { %v2461_v46 = vsel %vm2355_vm6, %v415_v42, %v419_v32  ;;  %2046 = vmatmul.mubr.msk.bf16.vlgmr.msra.gmra.mxu1 %vm459_vm1, %v2379_v55  ;;  %v1855_v51 = vrot.slane %v2350_v33, 9  ;;  %v664_v52 = vrot.slane %v2362_v39, 5  ;;  %v667_v54 = vrot.slane %v2384_v58, 5  ;;  %v1379_v32 = vld [vmem:[%s2965_s2] sm:$0x3] }
  0x2b   : > { %v2467_v47 = vcombine.low %v2445_v41, %v2461_v46  ;;  %v2471_v48 = vsel %vm2355_vm6, %v439_v7, %v443_v43  ;;  %2064 = vmatpush3.bf16.msra.mxu1 %v997_v40  ;;  %2049 = vmatprep.mubr.msk.bf16.mxu1 %vm459_vm1, %v2396_v62  ;;  %v658_v56 = vsel %vm2423_vm7, %v1854_v26, %v657_v27  ;;  %v671_v60 = vrot.slane %v2375_v53, 5 }
  0x2c   : > { %2975 = vst [vmem:[#allocation2_spill] sm:$0xff] %v2471_v48  ;;  %v2479_v50 = vcombine.low %v2452_v6, %v2471_v48  ;;  %2120 = vmatprep.subr.msk.bf16.mxu1 %vm472_vm0, %v1891_v20  ;;  %v661_v57 = vsel %vm2423_vm7, %v659_v34, %v660_v45  ;;  %v2493_v59 = vcombine.low %v339_v8, %v340_v24  ;;  %v666_v33 = vrot.slane %v664_v52, 4 }
  0x2d   : > { %2019 = vmatprep.mubr.msk.bf16.mxu0 %vm459_vm1, %v2467_v47  ;;  %v665_v39 = vsel %vm2423_vm7, %v1855_v51, %v664_v52  ;;  %v1859_v58 = vcombine.low %v658_v56, %v661_v57  ;;  %v1856_v0 = vrot.slane %v2367_v44, 9  ;;  %v673_v1 = vrot.slane %v671_v60, 4  ;;  %v1885_v44 = vld [vmem:[%s2964_s1 + $0xc] sm:$0x3]  ;;  %v344_v51 = vld [vmem:[%s2302_s17 + $0x44] sm:$0x1] }
  0x2e   : > { %2020 = vmatmul.mubr.msk.bf16.gmra.mxu0 %vm459_vm1, %v2479_v50  ;;  %v668_v63 = vsel %vm2423_vm7, %v666_v33, %v667_v54  ;;  %v674_v2 = vrot.slane %v2411_v11, 5  ;;  %v983_v53 = vrot.slane %v340_v24, 5  ;;  %v905_v5 = vsel %vm472_vm0, %v1872_v16, 0 }
  0x2f   : > { %2035 = vmatprep.mubr.msk.bf16.mxu0 %vm459_vm1, %v1858_v49  ;;  %v2506_v4 = vcombine.low %v665_v39, %v668_v63  ;;  %v865_v9 = vshrl.u32 %v339_v8, 16  ;;  %v868_v12 = vshll.u32 %v339_v8, 16  ;;  %v878_v14 = vshrl.u32 %v340_v24, 16 }
  0x30   : > { %v1878_v15 = vrot.slane %v339_v8, 9  ;;  %v986_v17 = vrot.slane %v341_v3, 5  ;;  %v672_v11 = vsel %vm2423_vm7, %v1856_v0, %v671_v60  ;;  %v675_v21 = vsel %vm2423_vm7, %v673_v1, %v674_v2 }
  0x31   : > { %v985_v22 = vrot.slane %v983_v53, 4  ;;  %v874_v27 = vshll.u32 %v340_v24, 16  ;;  %v1191_v28 = vsel %vm472_vm0, %v1891_v20, 0  ;;  %v2528_v16 = vcombine.low %v672_v11, %v675_v21 }
  0x32   : > { %2050 = vmatmul.mubr.msk.bf16.gmra.mxu1 %vm459_vm1, %v2493_v59  ;;  %v984_v18 = vsel %vm2423_vm7, %v1878_v15, %v983_v53  ;;  %v867_v31 = vrot.slane %v865_v9, 4  ;;  %v870_v37 = vrot.slane %v868_v12, 5  ;;  %v880_v13 = vrot.slane %v878_v14, 4 }
  0x33   : > { %2065 = vmatprep.mubr.msk.bf16.mxu1 %vm459_vm1, %v1859_v58  ;;  %v987_v36 = vsel %vm2423_vm7, %v985_v22, %v986_v17  ;;  %v876_v38 = vrot.slane %v874_v27, 5  ;;  %v1159_v40 = vshrl.u32 %v2523_v29, 16  ;;  %v1162_v42 = vshll.u32 %v2523_v29, 16 }
  0x34   : > { %v1168_v43 = vshll.u32 %v2526_v30, 16  ;;  %v1172_v25 = vshrl.u32 %v2526_v30, 16  ;;  %v1880_v7 = vcombine.low %v984_v18, %v987_v36  ;;  %v871_v20 = vor.u32 %v870_v37, %v867_v31 }
  0x35   : > { %v881_v26 = vor.u32 %v880_v13, %v876_v38  ;;  %v884_v34 = vshll.u32 %v341_v3, 16  ;;  %v1161_v45 = vrot.slane %v1159_v40, 4  ;;  %v1164_v49 = vrot.slane %v1162_v42, 5 }
  0x36   : > { %2036 = vmatmul.mubr.msk.bf16.vlgmr.msra.gmra.mxu0 %vm459_vm1, %v1859_v58  ;;  %v1170_v8 = vrot.slane %v1168_v43, 5  ;;  %v1174_v24 = vrot.slane %v1172_v25, 4  ;;  %v872_v52 = vrot.slane %v871_v20, 4  ;;  %v1178_v33 = vshll.u32 %v344_v51, 16  ;;  %v1898_v58 = vld [vmem:[%s2964_s1 + $0x10] sm:$0x3] }
  0x37   : > { %2054 = vmatpush3.bf16.msra.mxu0 %v905_v5  ;;  %2039 = vmatprep.mubr.msk.bf16.mxu0 %vm459_vm1, %v2506_v4  ;;  %v882_v54 = vrot.slane %v881_v26, 4  ;;  %v886_v56 = vrot.slane %v884_v34, 5  ;;  %v1165_v57 = vor.u32 %v1164_v49, %v1161_v45  ;;  %v1083_v39 = vsel %vm472_vm0, %v1885_v44, 0 }
  0x38   : > { %2119 = vmatprep.subr.msk.bf16.mxu0 %vm472_vm0, %v1885_v44  ;;  %v1175_v60 = vor.u32 %v1174_v24, %v1170_v8  ;;  %v2562_v63 = vsel %vm2355_vm6, %v872_v52, %v876_v38  ;;  %v1180_v3 = vrot.slane %v1178_v33, 5  ;;  %v1386_v53 = vsel %vm472_vm0, %v1379_v32, 0 }
  0x39   : > { %v2566_v0 = vsel %vm2355_vm6, %v882_v54, %v886_v56  ;;  %v1166_v1 = vrot.slane %v1165_v57, 4  ;;  %v1283_v44 = vsel %vm472_vm0, %v1898_v58, 0  ;;  %v1886_v35 = vcombine.low %v2523_v29, %v2526_v30 }
  0x3a   : > { %2066 = vmatmul.mubr.msk.bf16.vlgmr.msra.gmra.mxu1 %vm459_vm1, %v2506_v4  ;;  %v1176_v2 = vrot.slane %v1175_v60, 4  ;;  %v1873_v5 = vcombine.low %v2562_v63, %v2566_v0 }
  0x3b   : > { %2084 = vmatpush3.bf16.msra.mxu1 %v1191_v28  ;;  %2069 = vmatprep.mubr.msk.bf16.mxu1 %vm459_vm1, %v2528_v16  ;;  %v1171_v9 = vsel %vm2355_vm6, %v1166_v1, %v1170_v8 }
  0x3c   : > { %2122 = vmatprep.subr.msk.bf16.mxu1 %vm472_vm0, %v1379_v32  ;;  %v1181_v12 = vsel %vm2355_vm6, %v1176_v2, %v1180_v3 }
  0x3d   : > { %v1892_v14 = vcombine.low %v1171_v9, %v1181_v12 }
  0x3e   : > { %2040 = vmatmul.mubr.msk.bf16.gmra.mxu0 %vm459_vm1, %v2528_v16 }
  0x3f   : > { %2055 = vmatprep.mubr.msk.bf16.mxu0 %vm459_vm1, %v2419_v19 }
  0x42   : > { %2070 = vmatmul.mubr.msk.bf16.gmra.mxu1 %vm459_vm1, %v1880_v7 }
  0x43   : > { %2085 = vmatprep.mubr.msk.bf16.mxu1 %vm459_vm1, %v2467_v47 }
  0x46   : > { %2056 = vmatmul.mubr.msk.bf16.vlgmr.msra.gmra.mxu0 %vm459_vm1, %v2467_v47 }
  0x47   : > { %2074 = vmatpush3.bf16.msra.mxu0 %v1083_v39  ;;  %2059 = vmatprep.mubr.msk.bf16.mxu0 %vm459_vm1, %v2479_v50 }
  0x48   : > { %2121 = vmatprep.subr.msk.bf16.mxu0 %vm472_vm0, %v1898_v58 }
  0x4a   : > { %2086 = vmatmul.mubr.msk.bf16.vlgmr.msra.gmra.mxu1 %vm459_vm1, %v2479_v50 }
  0x4b   : > { %2104 = vmatpush3.bf16.msra.mxu1 %v1386_v53  ;;  %2089 = vmatprep.mubr.msk.bf16.mxu1 %vm459_vm1, %v1873_v5 }
  0x4e   : > { %2060 = vmatmul.mubr.msk.bf16.gmra.mxu0 %vm459_vm1, %v1873_v5 }
  0x4f   : > { %2075 = vmatprep.mubr.msk.bf16.mxu0 %vm459_vm1, %v2379_v55  ;;  %v1269_v55 = vrot.slane %v2526_v30, 5 }
  0x52   : > { %2090 = vmatmul.mubr.msk.bf16.gmra.mxu1 %vm459_vm1, %v1892_v14 }
  0x53   : > { %2105 = vmatprep.mubr.msk.bf16.mxu1 %vm459_vm1, %v2419_v19  ;;  %v1271_v19 = vrot.slane %v1269_v55, 4 }
  0x56   : > { %2076 = vmatmul.mubr.msk.bf16.vlgmr.msra.gmra.mxu0 %vm459_vm1, %v2396_v62  ;;  %v1897_v62 = vrot.slane %v2523_v29, 9 }
  0x57   : > { %2094 = vmatpush3.bf16.msra.mxu0 %v1283_v44  ;;  %2079 = vmatprep.mubr.msk.bf16.mxu0 %vm459_vm1, %v2493_v59  ;;  %v1272_v59 = vrot.slane %v344_v51, 5 }
  0x5a   : > { %2106 = vmatmul.mubr.msk.bf16.vlgmr.msra.gmra.mxu1 %vm459_vm1, %v2467_v47  ;;  %v1270_v47 = vsel %vm2423_vm7, %v1897_v62, %v1269_v55  ;;  %v1463_v55 = vunpack.c.l.bf16 %v2445_v41 }
  0x5b   : > { %2109 = vmatprep.mubr.msk.bf16.mxu1 %vm459_vm1, %v2479_v50  ;;  %v1273_v50 = vsel %vm2423_vm7, %v1271_v19, %v1272_v59  ;;  %v1464_v59 = vunpack.c.l.bf16 %v2461_v46 }
  0x5e   : > { %2080 = vmatmul.mubr.msk.bf16.gmra.mxu0 %vm459_vm1, %v1886_v35  ;;  %v1461_v35 = vunpack.c.l.bf16 %v2392_v61 }
  0x5f   : > { %2095 = vmatprep.mubr.msk.bf16.mxu0 %vm459_vm1, %v2506_v4  ;;  %v1899_v4 = vcombine.low %v1270_v47, %v1273_v50  ;;  %v2701_v47 = vld [vmem:[%s2966_s3 + $0x2] ss:$0 sm:$0xff]  ;;  %v1462_v50 = vunpack.c.l.bf16 %v2408_v10 }
  0x60   : > { %v1476_v46 = vmul.f32 %v2701_v47, %v1463_v55 }
  0x62   : > { %2110 = vmatmul.mubr.msk.bf16.gmra.mxu1 %vm459_vm1, %v1873_v5 }
  0x66   : > { %2096 = vmatmul.mubr.msk.bf16.vlgmr.msra.gmra.mxu0 %vm459_vm1, %v2528_v16 }
  0x67   : > { %2099 = vmatprep.mubr.msk.bf16.mxu0 %vm459_vm1, %v1880_v7 }
  0x6e   : > { %2100 = vmatmul.mubr.msk.bf16.gmra.mxu0 %vm459_vm1, %v1899_v4 }
  0xd9   : > { %v2027_v15 = vpop.f32.mrf.mxu1 }
  0xdb   : > { %v610_v17 = vpop.f32.mrf.mxu1 }
  0xdd   : > { %v2612_v11 = vpop.f32.mrf.mxu1 }
  0xdf   : > { %v2614_v21 = vpop.f32.mrf.mxu1 }
  0xe2   : > { %v2616_v22 = vpop.f32.mrf.mxu1 }
  0xe4   : > { %v2618_v27 = vpop.f32.mrf.mxu1 }
  0xe5   : > { %v2017_v28 = vpop.f32.mrf.mxu0 }
  0xe6   : > { %v2620_v29 = vpop.f32.mrf.mxu1  ;;  %v619_v41 = vadd.f32 %v2027_v15, %v2017_v28  ;;  %v2720_v15 = vld [vmem:[%s2966_s3 + $0x3] ss:$0 sm:$0xff] }
  0xe7   : > { %v510_v30 = vpop.f32.mrf.mxu0 }
  0xe8   : > { %v2622_v16 = vpop.f32.mrf.mxu1 }
  0xe9   : > { %v2018_v23 = vpop.f32.mrf.mxu0 }
  0xea   : > { %v2624_v18 = vpop.f32.mrf.mxu1  ;;  %v622_v28 = vadd.f32 %v2612_v11, %v2018_v23  ;;  %v2737_v11 = vadd.f32 %v2720_v15, %v1476_v46 }
  0xeb   : > { %v2626_v31 = vpop.f32.mrf.mxu0 }
  0xec   : > { %v2628_v32 = vpop.f32.mrf.mxu1 }
  0xee   : > { %v2630_v36 = vpop.f32.mrf.mxu0  ;;  %v2632_v37 = vpop.f32.mrf.mxu1 }
  0xf0   : > { %v2634_v38 = vpop.f32.mrf.mxu0  ;;  %v2636_v13 = vpop.f32.mrf.mxu1 }
  0xf2   : > { %v2638_v40 = vpop.f32.mrf.mxu0  ;;  %v2640_v42 = vpop.f32.mrf.mxu1 }
  0xf4   : > { %v2642_v43 = vpop.f32.mrf.mxu0  ;;  %v2644_v25 = vpop.f32.mrf.mxu1 }
  0xf6   : > { %v2037_v7 = vpop.f32.mrf.mxu0  ;;  %v2646_v20 = vpop.f32.mrf.mxu1 }
  0xf7   : > { %v772_v10 = vadd.f32 %v2037_v7, %v619_v41 }
  0xf8   : > { %v739_v26 = vpop.f32.mrf.mxu0  ;;  %v2648_v34 = vpop.f32.mrf.mxu1 }
  0xfa   : > { %v2038_v45 = vpop.f32.mrf.mxu0  ;;  %v2650_v49 = vpop.f32.mrf.mxu1 }
  0xfb   : > { %v773_v7 = vadd.f32 %v2038_v45, %v622_v28  ;;  %v614_v28 = vadd.f32 %v2614_v21, %v2626_v31 }
  0xfc   : > { %v2652_v8 = vpop.f32.mrf.mxu0  ;;  %v2654_v24 = vpop.f32.mrf.mxu1 }
  0xfe   : > { %v2656_v51 = vpop.f32.mrf.mxu0  ;;  %v2658_v52 = vpop.f32.mrf.mxu1 }
 0x100   : > { %v2660_v54 = vpop.f32.mrf.mxu0  ;;  %v2662_v56 = vpop.f32.mrf.mxu1 }
 0x102   : > { %v2664_v57 = vpop.f32.mrf.mxu0  ;;  %v2666_v60 = vpop.f32.mrf.mxu1 }
 0x103   : > { %2976 = vst [vmem:[#allocation3_spill] sm:$0xff] %v2666_v60  ;;  %v1467_v60 = vunpack.c.l.bf16 %v2562_v63 }
 0x104   : > { %v2668_v33 = vpop.f32.mrf.mxu0  ;;  %v2670_v39 = vpop.f32.mrf.mxu1 }
 0x105   : > { %2977 = vst [vmem:[#allocation4_spill] sm:$0xff] %v2670_v39  ;;  %v1465_v39 = vunpack.c.l.bf16 %v2452_v6  ;;  %v635_v6 = vadd.f32 %v2616_v22, %v2630_v36  ;;  %v771_v22 = vadd.f32 %v2652_v8, %v614_v28  ;;  %v859_v36 = vadd.f32 %v2632_v37, %v773_v7 }
 0x106   : > { %v2057_v58 = vpop.f32.mrf.mxu0  ;;  %v2672_v1 = vpop.f32.mrf.mxu1  ;;  %v630_v8 = vadd.f32 %v2622_v16, %v2642_v43 }
 0x107   : > { %2978 = vst [vmem:[#allocation5_spill] sm:$0xff] %v2672_v1  ;;  %v776_v31 = vadd.f32 %v2656_v51, %v635_v6 }
 0x108   : > { %v2674_v2 = vpop.f32.mrf.mxu0  ;;  %v2676_v3 = vpop.f32.mrf.mxu1 }
 0x109   : > { %2979 = vst [vmem:[#allocation6_spill] sm:$0xff] %v2676_v3  ;;  %v611_v3 = vadd.f32 %v610_v17, %v510_v30  ;;  %v1477_v17 = vmul.f32 %v2701_v47, %v1464_v59  ;;  %v2734_v59 = vld [vmem:[%s2966_s3 + $0x1] ss:$0 sm:$0xff]  ;;  %v862_v6 = vadd.f32 %v2640_v42, %v776_v31 }
 0x10a   : > { %v2678_v53 = vpop.f32.mrf.mxu0  ;;  %v2680_v5 = vpop.f32.mrf.mxu1 }
 0x10b   : > { %v770_v30 = vadd.f32 %v739_v26, %v611_v3  ;;  %v858_v26 = vadd.f32 %v2624_v18, %v772_v10  ;;  %v2744_v45 = vadd.f32 %v2720_v15, %v1477_v17  ;;  %v1480_v3 = vmul.f32 %v2701_v47, %v1467_v60 }
 0x10c   : > { %v2682_v9 = vpop.f32.mrf.mxu0  ;;  %v2684_v12 = vpop.f32.mrf.mxu1  ;;  %v627_v18 = vadd.f32 %v2618_v27, %v2634_v38  ;;  %v638_v60 = vadd.f32 %v2620_v29, %v2638_v40  ;;  %v975_v37 = vadd.f32 %v2678_v53, %v859_v36  ;;  %v857_v53 = vadd.f32 %v2636_v13, %v771_v22 }
 0x10d   : > { %v856_v46 = vadd.f32 %v2628_v32, %v770_v30  ;;  %v2771_v38 = vadd.f32 %v2720_v15, %v1480_v3 }
 0x10e   : > { %v2687_v14 = vpop.f32.mrf.mxu0  ;;  %v2689_v44 = vpop.f32.mrf.mxu1  ;;  %v774_v51 = vadd.f32 %v2660_v54, %v627_v18 }
 0x10f   : > { %2980 = vst [vmem:[#allocation7_spill] sm:$0xff] %v2689_v44  ;;  %v1474_v44 = vmul.f32 %v2701_v47, %v1461_v35  ;;  %v1475_v35 = vmul.f32 %v2701_v47, %v1462_v50  ;;  %v1478_v50 = vmul.f32 %v2701_v47, %v1465_v39  ;;  %v974_v39 = vadd.f32 %v2057_v58, %v858_v26 }
 0x110   : > { %v2693_v62 = vpop.f32.mrf.mxu0  ;;  %v2695_v19 = vpop.f32.mrf.mxu1  ;;  %v972_v32 = vadd.f32 %v2674_v2, %v856_v46  ;;  %v777_v58 = vadd.f32 %v2664_v57, %v638_v60  ;;  %v775_v57 = vadd.f32 %v2668_v33, %v630_v8  ;;  %v973_v33 = vadd.f32 %v2682_v9, %v857_v53 }
 0x111   : > { %2981 = vst [vmem:[#allocation8_spill] sm:$0xff] %v2695_v19  ;;  %v2740_v23 = vadd.f32 %v2720_v15, %v1474_v44  ;;  %v2754_v48 = vadd.f32 %v2720_v15, %v1475_v35  ;;  %v2774_v40 = vadd.f32 %v2720_v15, %v1478_v50  ;;  %v1066_v35 = vadd.f32 %v2650_v49, %v974_v39 }
 0x112   : > { %v2704_v4 = vpop.f32.mrf.mxu0  ;;  %v2706_v61 = vpop.f32.mrf.mxu1  ;;  %v1064_v7 = vadd.f32 %v2654_v24, %v972_v32  ;;  %v860_v13 = vadd.f32 %v2644_v25, %v774_v51  ;;  %v1067_v24 = vadd.f32 %v2658_v52, %v975_v37  ;;  %v978_v9 = vadd.f32 %v2687_v14, %v862_v6  ;;  %v2984_v37 = vld [vmem:[#allocation3_spill] sm:$0xff] }
 0x113   : > { %2982 = vst [vmem:[#allocation9_spill] sm:$0xff] %v2706_v61 }
 0x114   : > { %v2708_v1 = vpop.f32.mrf.mxu0  ;;  %v2710_v19 = vpop.f32.mrf.mxu1  ;;  %v976_v25 = vadd.f32 %v2693_v62, %v860_v13 }
 0x115   : > { %2983 = vst [vmem:[#allocation10_spill] sm:$0xff] %v2710_v19 }
 0x116   : > { %v2077_v19 = vpop.f32.mrf.mxu0  ;;  %v2724_v55 = vpop.f32.mrf.mxu1 }
 0x117   : > { %v1152_v50 = vadd.f32 %v2077_v19, %v1066_v35  ;;  %v863_v19 = vadd.f32 %v2646_v20, %v777_v58  ;;  %v2985_v35 = vld [vmem:[#allocation4_spill] sm:$0xff] }
 0x118   : > { %v1119_v41 = vpop.f32.mrf.mxu0  ;;  %v2729_v61 = vpop.f32.mrf.mxu1 }
 0x119   : > { %v1150_v42 = vadd.f32 %v1119_v41, %v1064_v7  ;;  %v861_v41 = vadd.f32 %v2648_v34, %v775_v57  ;;  %v1260_v20 = vadd.f32 %v2680_v5, %v1152_v50  ;;  %v979_v14 = vadd.f32 %v2704_v4, %v863_v19  ;;  %v2834_v5 = vld [vmem:[%s2966_s3] ss:$0 sm:$0xff]  ;;  %v2986_v57 = vld [vmem:[#allocation7_spill] sm:$0xff] }
 0x11a   : > { %v2078_v63 = vpop.f32.mrf.mxu0  ;;  %v2107_v44 = vpop.f32.mrf.mxu1  ;;  %v1065_v34 = vadd.f32 %v2662_v56, %v973_v33  ;;  %v2988_v33 = vld [vmem:[#allocation6_spill] sm:$0xff] }
 0x11b   : > { %v1431_v21 = vadd.f32 %v2107_v44, %v2734_v59  ;;  %v1153_v52 = vadd.f32 %v2078_v63, %v1067_v24  ;;  %v977_v62 = vadd.f32 %v2708_v1, %v861_v41 }
 0x11c   : > { %v1122_v10 = vpop.f32.mrf.mxu0  ;;  %v1422_v17 = vpop.f32.mrf.mxu1 }
 0x11d   : > { %v2767_v27 = vmax.f32 %v1431_v21, 0.0  ;;  %v1423_v29 = vadd.f32 %v2734_v59, %v1422_v17  ;;  %v1151_v1 = vadd.f32 %v1122_v10, %v1065_v34  ;;  %v1069_v13 = vadd.f32 %v2988_v33, %v977_v62 }
 0x11e   : > { %v2781_v2 = vpop.f32.mrf.mxu0  ;;  %v2108_v30 = vpop.f32.mrf.mxu1 }
 0x11f   : > { %v1949_v16 = vpack.c.bf16 %v2767_v27, %v2767_v27  ;;  %v2792_v43 = vmax.f32 %v1423_v29, 0.0  ;;  %v1434_v54 = vadd.f32 %v2108_v30, %v2734_v59  ;;  %v1258_v29 = vadd.f32 %v2684_v12, %v1150_v42 }
 0x120   : > { %v1135_v26 = vpop.f32.mrf.mxu0  ;;  %v1425_v3 = vpop.f32.mrf.mxu1  ;;  %v1070_v30 = vadd.f32 %v2984_v37, %v978_v9  ;;  %v1261_v12 = vadd.f32 %v2986_v57, %v1153_v52 }
 0x121   : > { %1570 = vst.msk [vmem:[%s2787_s30 + $0x8] sm:$0xf] %vm1527_vm8, %v1949_v16  ;;  %v1947_v49 = vpack.c.bf16 %v2792_v43, %v2792_v43  ;;  %v2803_v28 = vmax.f32 %v1434_v54, 0.0  ;;  %v1426_v46 = vadd.f32 %v2734_v59, %v1425_v3  ;;  %v1068_v16 = vadd.f32 %v2985_v35, %v976_v25 }
 0x122   : > { %v2082_v44 = vpop.f32.mrf.mxu0  ;;  %v2111_v18 = vpop.f32.mrf.mxu1  ;;  %v1156_v10 = vadd.f32 %v2781_v2, %v1070_v30  ;;  %v2989_v2 = vld [vmem:[#allocation8_spill] sm:$0xff] }
 0x123   : > { %1568 = vst.msk [vmem:[%s2787_s30] sm:$0xf] %vm1527_vm8, %v1947_v49  ;;  %v1950_v60 = vpack.c.bf16 %v2803_v28, %v2803_v28  ;;  %v2814_v39 = vmax.f32 %v1426_v46, 0.0  ;;  %v1447_v21 = vadd.f32 %v2111_v18, %v2734_v59  ;;  %v2987_v49 = vld [vmem:[#allocation5_spill] sm:$0xff]  ;;  %v1154_v9 = vadd.f32 %v1135_v26, %v1068_v16 }
 0x124   : > { %v1138_v22 = vpop.f32.mrf.mxu0  ;;  %v1438_v31 = vpop.f32.mrf.mxu1  ;;  %v1071_v46 = vadd.f32 %v2987_v49, %v979_v14  ;;  %v2990_v14 = vld [vmem:[#allocation9_spill] sm:$0xff] }
 0x125   : > { %1571 = vst.msk [vmem:[%s2787_s30 + $0xc] sm:$0xf] %vm1527_vm8, %v1950_v60  ;;  %v1948_v32 = vpack.c.bf16 %v2814_v39, %v2814_v39  ;;  %v2825_v36 = vmax.f32 %v1447_v21, 0.0  ;;  %v1439_v17 = vadd.f32 %v2734_v59, %v1438_v31  ;;  %v1155_v26 = vadd.f32 %v1138_v22, %v1069_v13 }
 0x126   : > { %v2097_v63 = vpop.f32.mrf.mxu0  ;;  %v2112_v8 = vpop.f32.mrf.mxu1  ;;  %v1157_v25 = vadd.f32 %v2082_v44, %v1071_v46  ;;  %v1264_v62 = vadd.f32 %v2990_v14, %v1156_v10 }
 0x127   : > { %v1352_v51 = vadd.f32 %v2097_v63, %v1260_v20  ;;  %1569 = vst.msk [vmem:[%s2787_s30 + $0x4] sm:$0xf] %vm1527_vm8, %v1948_v32  ;;  %v1953_v4 = vpack.c.bf16 %v2825_v36, %v2825_v36  ;;  %v2841_v58 = vmax.f32 %v1439_v17, 0.0  ;;  %v1450_v56 = vadd.f32 %v2112_v8, %v2734_v59 }
 0x128   : > { %v1319_v54 = vpop.f32.mrf.mxu0  ;;  %v1441_v53 = vpop.f32.mrf.mxu1 }
 0x129   : > { %v1365_v6 = vadd.f32 %v2834_v5, %v1352_v51  ;;  %v1350_v7 = vadd.f32 %v1319_v54, %v1258_v29  ;;  %1574 = vst.msk [vmem:[%s2787_s30 + $0x18] sm:$0xf] %vm1527_vm8, %v1953_v4  ;;  %v1951_v3 = vpack.c.bf16 %v2841_v58, %v2841_v58  ;;  %v2852_v50 = vmax.f32 %v1450_v56, 0.0  ;;  %v2991_v56 = vld [vmem:[#allocation10_spill] sm:$0xff] }
 0x12a   : > { %v2098_v42 = vpop.f32.mrf.mxu0  ;;  %v1442_v24 = vadd.f32 %v2734_v59, %v1441_v53  ;;  %v1259_v59 = vadd.f32 %v2989_v2, %v1151_v1  ;;  %v1262_v1 = vadd.f32 %v2991_v56, %v1154_v9 }
 0x12b   : > { %v1373_v18 = vmax.f32 %v1365_v6, 0.0  ;;  %v1363_v19 = vadd.f32 %v2834_v5, %v1350_v7  ;;  %v1353_v60 = vadd.f32 %v2098_v42, %v1261_v12  ;;  %1572 = vst.msk [vmem:[%s2787_s30 + $0x10] sm:$0xf] %vm1527_vm8, %v1951_v3  ;;  %v1954_v21 = vpack.c.bf16 %v2852_v50, %v2852_v50 }
 0x12c   : > { %v1322_v41 = vpop.f32.mrf.mxu0  ;;  %v2870_v52 = vmax.f32 %v1442_v24, 0.0  ;;  %v2992_v6 = vunpack.c.l.bf16 %v2566_v0 }
 0x12d   : > { %v1941_v31 = vpack.c.bf16 %v1373_v18, %v1373_v18  ;;  %v1578_v20 = vadd.f32 %v2767_v27, %v1373_v18  ;;  %v1371_v32 = vmax.f32 %v1363_v19, 0.0  ;;  %v1366_v17 = vadd.f32 %v2834_v5, %v1353_v60  ;;  %1575 = vst.msk [vmem:[%s2787_s30 + $0x1c] sm:$0xf] %vm1527_vm8, %v1954_v21  ;;  %v2993_v18 = vld [vmem:[#allocation2_spill] sm:$0xff] }
 0x12e   : > { %v1351_v44 = vadd.f32 %v1322_v41, %v1259_v59  ;;  %v2101_v34 = vpop.f32.mrf.mxu0  ;;  %v1952_v63 = vpack.c.bf16 %v2870_v52, %v2870_v52  ;;  %v1481_v7 = vmul.f32 %v2701_v47, %v2992_v6 }
 0x12f   : > { %1530 = vst.msk [vmem:[%s2867_s11 + $0x8] sm:$0xf] %vm1527_vm8, %v1941_v31  ;;  %v1586_v29 = vadd.f32 %v1578_v20, %v2737_v11  ;;  %v1939_v27 = vpack.c.bf16 %v1371_v32, %v1371_v32  ;;  %v1576_v8 = vadd.f32 %v2792_v43, %v1371_v32  ;;  %v1374_v51 = vmax.f32 %v1366_v17, 0.0 }
 0x130   : > { %v1364_v22 = vadd.f32 %v2834_v5, %v1351_v44  ;;  %v1356_v4 = vadd.f32 %v2101_v34, %v1264_v62  ;;  %v1335_v37 = vpop.f32.mrf.mxu0  ;;  %1573 = vst.msk [vmem:[%s2787_s30 + $0x14] sm:$0xf] %vm1527_vm8, %v1952_v63  ;;  %v1265_v11 = vadd.f32 %v2724_v55, %v1157_v25  ;;  %v1494_v25 = vadd.f32 %v2720_v15, %v1481_v7 }
 0x131   : > { %v1957_v30 = vpack.c.bf16 %v1586_v29, %v1586_v29  ;;  %1528 = vst.msk [vmem:[%s2867_s11] sm:$0xf] %vm1527_vm8, %v1939_v27  ;;  %v1584_v43 = vadd.f32 %v1576_v8, %v2740_v23  ;;  %v1942_v35 = vpack.c.bf16 %v1374_v51, %v1374_v51  ;;  %v1579_v16 = vadd.f32 %v2803_v28, %v1374_v51 }
 0x132   : > { %v1372_v54 = vmax.f32 %v1364_v22, 0.0  ;;  %v1369_v57 = vadd.f32 %v2834_v5, %v1356_v4  ;;  %v1354_v12 = vadd.f32 %v1335_v37, %v1262_v1  ;;  %v2102_v53 = vpop.f32.mrf.mxu0  ;;  %v1263_v28 = vadd.f32 %v2729_v61, %v1155_v26 }
 0x133   : > { %1626 = vst.msk [vmem:[%s2887_s14 + $0x8] sm:$0xf] %vm1527_vm8, %v1957_v30  ;;  %v1955_v55 = vpack.c.bf16 %v1584_v43, %v1584_v43  ;;  %1531 = vst.msk [vmem:[%s2867_s11 + $0xc] sm:$0xf] %vm1527_vm8, %v1942_v35  ;;  %v1587_v23 = vadd.f32 %v1579_v16, %v2744_v45  ;;  %v1357_v3 = vadd.f32 %v2102_v53, %v1265_v11  ;;  %v2994_v45 = vunpack.c.l.bf16 %v2993_v18 }
 0x134   : > { %v1940_v10 = vpack.c.bf16 %v1372_v54, %v1372_v54  ;;  %v1577_v49 = vadd.f32 %v2814_v39, %v1372_v54  ;;  %v1377_v46 = vmax.f32 %v1369_v57, 0.0  ;;  %v1367_v0 = vadd.f32 %v2834_v5, %v1354_v12  ;;  %v1338_v33 = vpop.f32.mrf.mxu0 }
 0x135   : > { %1624 = vst.msk [vmem:[%s2887_s14] sm:$0xf] %vm1527_vm8, %v1955_v55  ;;  %v1958_v13 = vpack.c.bf16 %v1587_v23, %v1587_v23  ;;  %v1370_v42 = vadd.f32 %v2834_v5, %v1357_v3  ;;  %v1355_v24 = vadd.f32 %v1338_v33, %v1263_v28  ;;  %v1479_v19 = vmul.f32 %v2701_v47, %v2994_v45 }
 0x136   : > { %1529 = vst.msk [vmem:[%s2867_s11 + $0x4] sm:$0xf] %vm1527_vm8, %v1940_v10  ;;  %v1585_v61 = vadd.f32 %v1577_v49, %v2754_v48  ;;  %v1945_v39 = vpack.c.bf16 %v1377_v46, %v1377_v46  ;;  %v1582_v60 = vadd.f32 %v2825_v36, %v1377_v46  ;;  %v1375_v21 = vmax.f32 %v1367_v0, 0.0 }
 0x137   : > { %1627 = vst.msk [vmem:[%s2887_s14 + $0xc] sm:$0xf] %vm1527_vm8, %v1958_v13  ;;  %v1378_v9 = vmax.f32 %v1370_v42, 0.0  ;;  %v1368_v2 = vadd.f32 %v2834_v5, %v1355_v24  ;;  %v1492_v32 = vadd.f32 %v2720_v15, %v1479_v19 }
 0x138   : > { %v1956_v59 = vpack.c.bf16 %v1585_v61, %v1585_v61  ;;  %1534 = vst.msk [vmem:[%s2867_s11 + $0x18] sm:$0xf] %vm1527_vm8, %v1945_v39  ;;  %v1590_v48 = vadd.f32 %v1582_v60, %v2771_v38  ;;  %v1943_v47 = vpack.c.bf16 %v1375_v21, %v1375_v21  ;;  %v1580_v41 = vadd.f32 %v2841_v58, %v1375_v21 }
 0x139   : > { %v1946_v36 = vpack.c.bf16 %v1378_v9, %v1378_v9  ;;  %v1583_v31 = vadd.f32 %v2852_v50, %v1378_v9  ;;  %v1376_v20 = vmax.f32 %v1368_v2, 0.0 }
 0x13a   : > { %1625 = vst.msk [vmem:[%s2887_s14 + $0x4] sm:$0xf] %vm1527_vm8, %v1956_v59  ;;  %v1961_v5 = vpack.c.bf16 %v1590_v48, %v1590_v48  ;;  %1532 = vst.msk [vmem:[%s2867_s11 + $0x10] sm:$0xf] %vm1527_vm8, %v1943_v47  ;;  %v1588_v38 = vadd.f32 %v1580_v41, %v2774_v40 }
 0x13b   : > { %1535 = vst.msk [vmem:[%s2867_s11 + $0x1c] sm:$0xf] %vm1527_vm8, %v1946_v36  ;;  %v1591_v58 = vadd.f32 %v1583_v31, %v1494_v25  ;;  %v1944_v17 = vpack.c.bf16 %v1376_v20, %v1376_v20  ;;  %v1581_v26 = vadd.f32 %v2870_v52, %v1376_v20 }
 0x13c   : > { %1630 = vst.msk [vmem:[%s2887_s14 + $0x18] sm:$0xf] %vm1527_vm8, %v1961_v5  ;;  %v1959_v50 = vpack.c.bf16 %v1588_v38, %v1588_v38 }
 0x13d   : > { %v1962_v44 = vpack.c.bf16 %v1591_v58, %v1591_v58  ;;  %1533 = vst.msk [vmem:[%s2867_s11 + $0x14] sm:$0xf] %vm1527_vm8, %v1944_v17  ;;  %v1589_v15 = vadd.f32 %v1581_v26, %v1492_v32 }
 0x13e   : > { %1628 = vst.msk [vmem:[%s2887_s14 + $0x10] sm:$0xf] %vm1527_vm8, %v1959_v50 }
 0x13f   : > { %1631 = vst.msk [vmem:[%s2887_s14 + $0x1c] sm:$0xf] %vm1527_vm8, %v1962_v44  ;;  %v1960_v14 = vpack.c.bf16 %v1589_v15, %v1589_v15 }
 0x141   : > { %1629 = vst.msk [vmem:[%s2887_s14 + $0x14] sm:$0xf] %vm1527_vm8, %v1960_v14 }
 0x142 PF: > { %s17_s25 = sadd.s32 1, %s2208_s25   ;;  %s2995_s21 = smov %s2200_s23 }
 0x143   : > { %p14_p7 = scmp.ge.s32.totalorder %s17_s25, 10   ;;  %s2996_s22 = smov %s2204_s24 }
 0x144   : > { %s2997_s23 = smov %s3000_s26  ;;  %s2998_s24 = smov %s3004_s27 }
 0x145   :  { %16 = sbr.rel (!%p14_p7) target bundleno = 3 (0x3), region = 99 }

</bundles_post_ra>
